<compile_context>
chip_gen: v7x
topology: tpu7x:2x2x1
jax: 0.10.0
libtpu: 0.0.40
codegen_flags: <defaults>
</compile_context>

<pallas_src>
import functools

import jax
import jax.numpy as jnp
from jax.experimental import pallas as pl
from jax.experimental.pallas import tpu as pltpu


def _mlp_3hl_reverse_g_kernel(
    x_ref, w1_ref, b1_ref, w2_ref, b2_ref, w3_ref, b3_ref, w4_ref, b4_ref,
    o_ref, *, negative_slope):
    """One batch tile: fc1..fc3 + LeakyReLU(0.2), fc4 + ReLU. All matmuls
    accumulate in f32 on the MXU; activations run in f32 on the VPU."""

    def leaky(h):
        return jnp.where(h >= 0.0, h, negative_slope * h)

    x = x_ref[...]

    # fc1 + LeakyReLU
    h = jnp.dot(x, w1_ref[...], preferred_element_type=jnp.float32)
    h = leaky(h + b1_ref[...])

    # fc2 + LeakyReLU  (cast back to weight dtype so bf16 weights use the
    # native bf16 MXU path; f32 weights -> no-op cast)
    h = jnp.dot(h.astype(w2_ref.dtype), w2_ref[...],
                preferred_element_type=jnp.float32)
    h = leaky(h + b2_ref[...])

    # fc3 + LeakyReLU
    h = jnp.dot(h.astype(w3_ref.dtype), w3_ref[...],
                preferred_element_type=jnp.float32)
    h = leaky(h + b3_ref[...])

    # fc4 + ReLU
    h = jnp.dot(h.astype(w4_ref.dtype), w4_ref[...],
                preferred_element_type=jnp.float32)
    h = jnp.maximum(h + b4_ref[...], 0.0)

    o_ref[...] = h.astype(o_ref.dtype)


# Cap the streaming batch tile: keeps x/out tiles a few MiB (fits v5e's 16 MiB
# and v7x's 32 MiB default scoped VMEM with double buffering) and guarantees
# >= 2 grid steps at realistic batch sizes so the "parallel" axis pipelines and
# shards across v7x's two TensorCores.
_DEFAULT_BLOCK_B = 1024


def mlp_3hl_reverse_g(res, r_noise, params, *, block_b=None,
                      compute_dtype=None, negative_slope=0.2):
    """res: [B, d_res]; r_noise: [B, d_noise]; params = (w1_t, b1, ..., w4_t, b4)
    with weights pre-transposed to [in_features, out_features].
    Returns [B, att_size]."""
    w1_t, b1, w2_t, b2, w3_t, b3, w4_t, b4 = params

    # cat(res, r_noise, dim=1) — done once at the XLA level, outside the kernel.
    x = jnp.concatenate([res, r_noise], axis=1)

    # Optional bf16 streaming path (halves HBM bytes on this memory-bound
    # kernel; f32 accumulation preserved via preferred_element_type).
    if compute_dtype is not None:
        x = x.astype(compute_dtype)
        w1_t = w1_t.astype(compute_dtype)
        w2_t = w2_t.astype(compute_dtype)
        w3_t = w3_t.astype(compute_dtype)
        w4_t = w4_t.astype(compute_dtype)

    B, d_in = x.shape
    h1 = w1_t.shape[1]
    h2 = w2_t.shape[1]
    h3 = w3_t.shape[1]
    d_out = w4_t.shape[1]
    out_dtype = res.dtype

    if block_b is None:
        block_b = min(B, _DEFAULT_BLOCK_B)
    grid = (pl.cdiv(B, block_b),)

    # Biases as f32 rows (broadcast over the batch-tile sublanes inside the
    # kernel; bias add stays in f32 even on bf16 inputs).
    b1_row = b1.astype(jnp.float32).reshape(1, h1)
    b2_row = b2.astype(jnp.float32).reshape(1, h2)
    b3_row = b3.astype(jnp.float32).reshape(1, h3)
    b4_row = b4.astype(jnp.float32).reshape(1, d_out)

    flops = 2 * B * (d_in * h1 + h1 * h2 + h2 * h3 + h3 * d_out)
    bytes_accessed = (
        x.size * x.dtype.itemsize
        + B * d_out * jnp.dtype(out_dtype).itemsize
        + sum(w.size * w.dtype.itemsize for w in (w1_t, w2_t, w3_t, w4_t))
        + sum(b.size * 4 for b in (b1_row, b2_row, b3_row, b4_row))
    )

    kernel = functools.partial(_mlp_3hl_reverse_g_kernel,
                               negative_slope=negative_slope)

    return pl.pallas_call(
        kernel,
        out_shape=jax.ShapeDtypeStruct((B, d_out), out_dtype),
        grid_spec=pltpu.PrefetchScalarGridSpec(
            num_scalar_prefetch=0,
            grid=grid,
            in_specs=[
                pl.BlockSpec((block_b, d_in), lambda i: (i, 0)),  # x (streamed)
                pl.BlockSpec((d_in, h1), lambda i: (0, 0)),       # W1^T (resident)
                pl.BlockSpec((1, h1), lambda i: (0, 0)),          # b1
                pl.BlockSpec((h1, h2), lambda i: (0, 0)),         # W2^T (resident)
                pl.BlockSpec((1, h2), lambda i: (0, 0)),          # b2
                pl.BlockSpec((h2, h3), lambda i: (0, 0)),         # W3^T (resident)
                pl.BlockSpec((1, h3), lambda i: (0, 0)),          # b3
                pl.BlockSpec((h3, d_out), lambda i: (0, 0)),      # W4^T (resident)
                pl.BlockSpec((1, d_out), lambda i: (0, 0)),       # b4
            ],
            out_specs=pl.BlockSpec((block_b, d_out), lambda i: (i, 0)),
        ),
        compiler_params=pltpu.CompilerParams(
            dimension_semantics=("parallel",),
        ),
        cost_estimate=pl.CostEstimate(
            flops=flops, transcendentals=0, bytes_accessed=bytes_accessed),
    )(x, w1_t, b1_row, w2_t, b2_row, w3_t, b3_row, w4_t, b4_row)


def _reference(res, r_noise, params, negative_slope=0.2):
    w1_t, b1, w2_t, b2, w3_t, b3, w4_t, b4 = params
    x = jnp.concatenate([res, r_noise], axis=1)

    def leaky(h):
        return jnp.where(h >= 0.0, h, negative_slope * h)

    h = leaky(x @ w1_t + b1)
    h = leaky(h @ w2_t + b2)
    h = leaky(h @ w3_t + b3)
    return jnp.maximum(h @ w4_t + b4, 0.0)


if __name__ == "__main__":
    # Small, lane-friendly shapes:
    #   opt.res_size = d_res + d_noise = 128 (fc1 input dim after concat)
    #   opt.nrgh1 = opt.nrgh2 = opt.nrgh3 = 128, opt.att_size = 64, batch = 8
    batch, d_res, d_noise = 8, 96, 32
    res_size = d_res + d_noise
    nrgh1, nrgh2, nrgh3, att_size = 128, 128, 128, 64

    key = jax.random.PRNGKey(0)
    keys = jax.random.split(key, 10)

    res = jax.random.normal(keys[0], (batch, d_res), dtype=jnp.float32)
    r_noise = jax.random.normal(keys[1], (batch, d_noise), dtype=jnp.float32)

    # PyTorch Linear stores weight as [out, in]; keep the transposed [in, out]
    # layout for the kernel. weights_init: N(0, 0.02) weights, zero biases —
    # use small random biases too so the bias path is exercised.
    def make_layer(kw, kb, fan_in, fan_out):
        w_t = jax.random.normal(kw, (fan_in, fan_out), dtype=jnp.float32) * 0.02
        b = jax.random.normal(kb, (fan_out,), dtype=jnp.float32) * 0.02
        return w_t, b

    w1_t, b1 = make_layer(keys[2], keys[3], res_size, nrgh1)
    w2_t, b2 = make_layer(keys[4], keys[5], nrgh1, nrgh2)
    w3_t, b3 = make_layer(keys[6], keys[7], nrgh2, nrgh3)
    w4_t, b4 = make_layer(keys[8], keys[9], nrgh3, att_size)

    params = (w1_t, b1, w2_t, b2, w3_t, b3, w4_t, b4)

    # f32 path for a tight numerical check; pass compute_dtype=jnp.bfloat16 in
    # production on v6e/v7x to halve HBM traffic (bf16 MXU, f32 accumulation).
    out = mlp_3hl_reverse_g(res, r_noise, params)
    out = jax.block_until_ready(out)

    ref = _reference(res, r_noise, params)
    assert out.shape == (batch, att_size)
    assert jnp.allclose(out, ref, atol=1e-5, rtol=1e-5), "mismatch vs reference"

    print("KERNEL_OK")
</pallas_src>

<mosaic_0001>
module attributes {stable_mosaic.version = 11 : i64} {
  func.func @_mlp_3hl_reverse_g_kernel(%arg0: i32, %arg1: memref<8x128xf32, #tpu.memory_space<vmem>>, %arg2: memref<128x128xf32, #tpu.memory_space<vmem>>, %arg3: memref<1x128xf32, #tpu.memory_space<vmem>>, %arg4: memref<128x128xf32, #tpu.memory_space<vmem>>, %arg5: memref<1x128xf32, #tpu.memory_space<vmem>>, %arg6: memref<128x128xf32, #tpu.memory_space<vmem>>, %arg7: memref<1x128xf32, #tpu.memory_space<vmem>>, %arg8: memref<128x64xf32, #tpu.memory_space<vmem>>, %arg9: memref<1x64xf32, #tpu.memory_space<vmem>>, %arg10: memref<8x64xf32, #tpu.memory_space<vmem>>) attributes {dimension_semantics = [#tpu.dimension_semantics<parallel>], iteration_bounds = array<i64: 1>, scalar_prefetch = 0 : i64, scratch_operands = 0 : i64, tpu.core_type = #tpu.core_type<tc>, window_params = [{transform_indices = @transform_0, window_bounds = array<i64: 8, 128>}, {pipeline_mode = #tpu.pipeline_mode<synchronous>, transform_indices = @transform_1, window_bounds = array<i64: 128, 128>}, {pipeline_mode = #tpu.pipeline_mode<synchronous>, transform_indices = @transform_2, window_bounds = array<i64: 1, 128>}, {pipeline_mode = #tpu.pipeline_mode<synchronous>, transform_indices = @transform_3, window_bounds = array<i64: 128, 128>}, {pipeline_mode = #tpu.pipeline_mode<synchronous>, transform_indices = @transform_4, window_bounds = array<i64: 1, 128>}, {pipeline_mode = #tpu.pipeline_mode<synchronous>, transform_indices = @transform_5, window_bounds = array<i64: 128, 128>}, {pipeline_mode = #tpu.pipeline_mode<synchronous>, transform_indices = @transform_6, window_bounds = array<i64: 1, 128>}, {pipeline_mode = #tpu.pipeline_mode<synchronous>, transform_indices = @transform_7, window_bounds = array<i64: 128, 64>}, {pipeline_mode = #tpu.pipeline_mode<synchronous>, transform_indices = @transform_8, window_bounds = array<i64: 1, 64>}, {transform_indices = @transform_9, window_bounds = array<i64: 8, 64>}]} {
    %c0 = arith.constant 0 : index
    %c0_0 = arith.constant 0 : index
    %0 = vector.load %arg1[%c0, %c0_0] : memref<8x128xf32, #tpu.memory_space<vmem>>, vector<8x128xf32>
    %c0_1 = arith.constant 0 : index
    %c0_2 = arith.constant 0 : index
    %1 = vector.load %arg2[%c0_1, %c0_2] : memref<128x128xf32, #tpu.memory_space<vmem>>, vector<128x128xf32>
    %cst = arith.constant dense<0.000000e+00> : vector<8x128xf32>
    %2 = tpu.matmul %0, %1, %cst {dimension_numbers = #tpu.dot_dimension_numbers<[1], [0], [0], [1], [0, 0, 1, 1], [], []>} : vector<8x128xf32>, vector<128x128xf32>, vector<8x128xf32> -> vector<8x128xf32>
    %c0_3 = arith.constant 0 : index
    %c0_4 = arith.constant 0 : index
    %3 = vector.load %arg3[%c0_3, %c0_4] : memref<1x128xf32, #tpu.memory_space<vmem>>, vector<1x128xf32>
    %4 = vector.broadcast %3 : vector<1x128xf32> to vector<8x128xf32>
    %5 = arith.addf %2, %4 : vector<8x128xf32>
    %cst_5 = arith.constant 0.000000e+00 : f32
    %6 = vector.broadcast %cst_5 : f32 to vector<8x128xf32>
    %7 = arith.cmpf oge, %5, %6 : vector<8x128xf32>
    %cst_6 = arith.constant 2.000000e-01 : f32
    %8 = vector.broadcast %cst_6 : f32 to vector<8x128xf32>
    %9 = arith.mulf %8, %5 : vector<8x128xf32>
    %10 = arith.select %7, %5, %9 : vector<8x128xi1>, vector<8x128xf32>
    %c0_7 = arith.constant 0 : index
    %c0_8 = arith.constant 0 : index
    %11 = vector.load %arg4[%c0_7, %c0_8] : memref<128x128xf32, #tpu.memory_space<vmem>>, vector<128x128xf32>
    %cst_9 = arith.constant dense<0.000000e+00> : vector<8x128xf32>
    %12 = tpu.matmul %10, %11, %cst_9 {dimension_numbers = #tpu.dot_dimension_numbers<[1], [0], [0], [1], [0, 0, 1, 1], [], []>} : vector<8x128xf32>, vector<128x128xf32>, vector<8x128xf32> -> vector<8x128xf32>
    %c0_10 = arith.constant 0 : index
    %c0_11 = arith.constant 0 : index
    %13 = vector.load %arg5[%c0_10, %c0_11] : memref<1x128xf32, #tpu.memory_space<vmem>>, vector<1x128xf32>
    %14 = vector.broadcast %13 : vector<1x128xf32> to vector<8x128xf32>
    %15 = arith.addf %12, %14 : vector<8x128xf32>
    %cst_12 = arith.constant 0.000000e+00 : f32
    %16 = vector.broadcast %cst_12 : f32 to vector<8x128xf32>
    %17 = arith.cmpf oge, %15, %16 : vector<8x128xf32>
    %cst_13 = arith.constant 2.000000e-01 : f32
    %18 = vector.broadcast %cst_13 : f32 to vector<8x128xf32>
    %19 = arith.mulf %18, %15 : vector<8x128xf32>
    %20 = arith.select %17, %15, %19 : vector<8x128xi1>, vector<8x128xf32>
    %c0_14 = arith.constant 0 : index
    %c0_15 = arith.constant 0 : index
    %21 = vector.load %arg6[%c0_14, %c0_15] : memref<128x128xf32, #tpu.memory_space<vmem>>, vector<128x128xf32>
    %cst_16 = arith.constant dense<0.000000e+00> : vector<8x128xf32>
    %22 = tpu.matmul %20, %21, %cst_16 {dimension_numbers = #tpu.dot_dimension_numbers<[1], [0], [0], [1], [0, 0, 1, 1], [], []>} : vector<8x128xf32>, vector<128x128xf32>, vector<8x128xf32> -> vector<8x128xf32>
    %c0_17 = arith.constant 0 : index
    %c0_18 = arith.constant 0 : index
    %23 = vector.load %arg7[%c0_17, %c0_18] : memref<1x128xf32, #tpu.memory_space<vmem>>, vector<1x128xf32>
    %24 = vector.broadcast %23 : vector<1x128xf32> to vector<8x128xf32>
    %25 = arith.addf %22, %24 : vector<8x128xf32>
    %cst_19 = arith.constant 0.000000e+00 : f32
    %26 = vector.broadcast %cst_19 : f32 to vector<8x128xf32>
    %27 = arith.cmpf oge, %25, %26 : vector<8x128xf32>
    %cst_20 = arith.constant 2.000000e-01 : f32
    %28 = vector.broadcast %cst_20 : f32 to vector<8x128xf32>
    %29 = arith.mulf %28, %25 : vector<8x128xf32>
    %30 = arith.select %27, %25, %29 : vector<8x128xi1>, vector<8x128xf32>
    %c0_21 = arith.constant 0 : index
    %c0_22 = arith.constant 0 : index
    %31 = vector.load %arg8[%c0_21, %c0_22] : memref<128x64xf32, #tpu.memory_space<vmem>>, vector<128x64xf32>
    %cst_23 = arith.constant dense<0.000000e+00> : vector<8x64xf32>
    %32 = tpu.matmul %30, %31, %cst_23 {dimension_numbers = #tpu.dot_dimension_numbers<[1], [0], [0], [1], [0, 0, 1, 1], [], []>} : vector<8x128xf32>, vector<128x64xf32>, vector<8x64xf32> -> vector<8x64xf32>
    %c0_24 = arith.constant 0 : index
    %c0_25 = arith.constant 0 : index
    %33 = vector.load %arg9[%c0_24, %c0_25] : memref<1x64xf32, #tpu.memory_space<vmem>>, vector<1x64xf32>
    %34 = vector.broadcast %33 : vector<1x64xf32> to vector<8x64xf32>
    %35 = arith.addf %32, %34 : vector<8x64xf32>
    %cst_26 = arith.constant 0.000000e+00 : f32
    %36 = vector.broadcast %cst_26 : f32 to vector<8x64xf32>
    %37 = arith.maximumf %35, %36 : vector<8x64xf32>
    %c0_27 = arith.constant 0 : index
    %c0_28 = arith.constant 0 : index
    %38 = vector.load %arg10[%c0_27, %c0_28] : memref<8x64xf32, #tpu.memory_space<vmem>>, vector<8x64xf32>
    tpu.vector_store %arg10[%c0_27, %c0_28], %37 {strides = array<i32>} : memref<8x64xf32, #tpu.memory_space<vmem>>, vector<8x64xf32>,
    return
  }
  func.func @transform_0(%arg0: i32) -> (i32, i32) {
    %c0_i32 = arith.constant 0 : i32
    %c0_i32_0 = arith.constant 0 : i32
    return %arg0, %c0_i32 : i32, i32
  }
  func.func @transform_1(%arg0: i32) -> (i32, i32) {
    %c0_i32 = arith.constant 0 : i32
    %c0_i32_0 = arith.constant 0 : i32
    %c0_i32_1 = arith.constant 0 : i32
    return %c0_i32, %c0_i32_0 : i32, i32
  }
  func.func @transform_2(%arg0: i32) -> (i32, i32) {
    %c0_i32 = arith.constant 0 : i32
    %c0_i32_0 = arith.constant 0 : i32
    %c0_i32_1 = arith.constant 0 : i32
    return %c0_i32, %c0_i32_0 : i32, i32
  }
  func.func @transform_3(%arg0: i32) -> (i32, i32) {
    %c0_i32 = arith.constant 0 : i32
    %c0_i32_0 = arith.constant 0 : i32
    %c0_i32_1 = arith.constant 0 : i32
    return %c0_i32, %c0_i32_0 : i32, i32
  }
  func.func @transform_4(%arg0: i32) -> (i32, i32) {
    %c0_i32 = arith.constant 0 : i32
    %c0_i32_0 = arith.constant 0 : i32
    %c0_i32_1 = arith.constant 0 : i32
    return %c0_i32, %c0_i32_0 : i32, i32
  }
  func.func @transform_5(%arg0: i32) -> (i32, i32) {
    %c0_i32 = arith.constant 0 : i32
    %c0_i32_0 = arith.constant 0 : i32
    %c0_i32_1 = arith.constant 0 : i32
    return %c0_i32, %c0_i32_0 : i32, i32
  }
  func.func @transform_6(%arg0: i32) -> (i32, i32) {
    %c0_i32 = arith.constant 0 : i32
    %c0_i32_0 = arith.constant 0 : i32
    %c0_i32_1 = arith.constant 0 : i32
    return %c0_i32, %c0_i32_0 : i32, i32
  }
  func.func @transform_7(%arg0: i32) -> (i32, i32) {
    %c0_i32 = arith.constant 0 : i32
    %c0_i32_0 = arith.constant 0 : i32
    %c0_i32_1 = arith.constant 0 : i32
    return %c0_i32, %c0_i32_0 : i32, i32
  }
  func.func @transform_8(%arg0: i32) -> (i32, i32) {
    %c0_i32 = arith.constant 0 : i32
    %c0_i32_0 = arith.constant 0 : i32
    %c0_i32_1 = arith.constant 0 : i32
    return %c0_i32, %c0_i32_0 : i32, i32
  }
  func.func @transform_9(%arg0: i32) -> (i32, i32) {
    %c0_i32 = arith.constant 0 : i32
    %c0_i32_0 = arith.constant 0 : i32
    return %arg0, %c0_i32 : i32, i32
  }
}

</mosaic_0001>

<bundles_post_ra>
// kernel: tpu_custom_call.1
= control target key start
LH: loop header
LB: loop body
LE: loop exit
PB: predicated region body
PF: predicated region fallthrough
CT: control target
= control target key end

     0   :  { %14 = vsyncpa [#allocation3], 0  ;;  %s1095_s0 = inlined_call_operand.vmem [shape: f32[8,128], index: 0, kind: input, shape index: {}]   ;;  %s1096_s1 = inlined_call_operand.vmem [shape: f32[128,128], index: 1, kind: input, shape index: {}]   ;;  %s1097_s2 = inlined_call_operand.vmem [shape: f32[1,128], index: 2, kind: input, shape index: {}]   ;;  %s1098_s3 = inlined_call_operand.hbm [shape: f32[128,128], index: 3, kind: input, shape index: {}]   ;;  %s1099_s4 = inlined_call_operand.vmem [shape: f32[1,128], index: 4, kind: input, shape index: {}]   ;;  %s1100_s5 = inlined_call_operand.hbm [shape: f32[128,128], index: 5, kind: input, shape index: {}]   ;;  %s1101_s6 = inlined_call_operand.vmem [shape: f32[1,128], index: 6, kind: input, shape index: {}]   ;;  %s1102_s7 = inlined_call_operand.vmem [shape: f32[128,64], index: 7, kind: input, shape index: {}]   ;;  %s1103_s8 = inlined_call_operand.vmem [shape: f32[1,64], index: 8, kind: input, shape index: {}]   ;;  %s1104_s9 = inlined_call_operand.hbm [shape: f32[8,64], index: 9, kind: output, shape index: {}]  }
   0x1   :  { %15 = vsyncpa [#allocation6], 0 }
   0x2   :  { %16 = vsyncpa [#allocation4], 0  ;;  %s850_s30 = smov [#allocation2]   ;;  %s778_s13 = scalar_lea.hbm %s1098_s3, 2048 }
   0x3   :  { %s28_s10 = sshll.u32 %s850_s30, 4  ;;  %p779_p0 = scmp.ne.s32.totalorder %s1098_s3, %s778_s13  ;;  %s29_s10 = int_to_ptr.vmem [resolvable:$true] %s28_s10 }
   0x4   :  { %p782_p1 = scmp.lt.u32.totalorder %s778_s13, %s1098_s3 }
   0x6   :  { %p784_p2 = pnand %p782_p1, %p779_p0 }
   0x8   :  { %787 = shalt.err (!%p784_p2)
}
   0x9   :  { %s788_s18 = scalar_lea.vmem %s29_s10, 2048  ;;  %p793_p4 = scmp.lt.s32.totalorder %s29_s10, %s29_s10 }
   0xa   :  { %p789_p3 = scmp.ne.s32.totalorder %s29_s10, %s788_s18  ;;  %p794_p5 = scmp.lt.s32.totalorder %s788_s18, %s788_s18 }
   0xc   :  { %p795_p6 = por %p794_p5, %p793_p4 }
   0xe   :  { %p796_p7 = pnand %p795_p6, %p789_p3 }
  0x10   :  { %799 = shalt.err (!%p796_p7)
}
  0x11   :  { %s851_s19 = smov 128   ;;  %s852_s20 = smov 8  }
  0x12   :  { %34 = dma.hbm_to_vmem [thread:$0]  %s1098_s3, 2048, %s29_s10, [#allocation3], %s851_s19, %s851_s19, %s852_s20  }
  0x13   :  { %s853_s23 = smov [#allocation5]   ;;  %s800_s27 = scalar_lea.hbm %s1100_s5, 2048 }
  0x14   :  { %s42_s24 = sshll.u32 %s853_s23, 4  ;;  %p801_p8 = scmp.ne.s32.totalorder %s1100_s5, %s800_s27  ;;  %s43_s24 = int_to_ptr.vmem [resolvable:$true] %s42_s24 }
  0x15   :  { %p804_p9 = scmp.lt.u32.totalorder %s800_s27, %s1100_s5 }
  0x17   :  { %p806_p10 = pnand %p804_p9, %p801_p8 }
  0x19   :  { %809 = shalt.err (!%p806_p10)
}
  0x1a   :  { %s810_s12 = scalar_lea.vmem %s43_s24, 2048  ;;  %p815_p12 = scmp.lt.s32.totalorder %s43_s24, %s43_s24 }
  0x1b   :  { %p811_p11 = scmp.ne.s32.totalorder %s43_s24, %s810_s12  ;;  %p816_p13 = scmp.lt.s32.totalorder %s810_s12, %s810_s12 }
  0x1d   :  { %p817_p0 = por %p816_p13, %p815_p12 }
  0x1f   :  { %p818_p1 = pnand %p817_p0, %p811_p11 }
  0x21   :  { %821 = shalt.err (!%p818_p1)
}
  0x22   :  { %48 = dma.hbm_to_vmem [thread:$0]  %s1100_s5, 2048, %s43_s24, [#allocation6], %s851_s19, %s851_s19, %s852_s20  }
  0x23   :  { %844 = dma.done.wait [#allocation3], 2048  }
  0x24   :  { %845 = vsyncadd [#allocation3], 4294965248 }
  0x25   :  { %846 = dma.done.wait [#allocation6], 2048  }
  0x26   :  { %847 = vsyncadd [#allocation6], 4294965248  ;;  %v854_v0 = vmov 0.0|0.0   ;;  %vm855_vm0 = vmmov 0   ;;  %v856_v1 = vmov 0.0   ;;  %v62_v2 = vld [vmem:[%s1096_s1] sm:$0xff] }
  0x27   :  { %674 = vmatprep.subr.bf16.mxu0 %v854_v0  ;;  %566 = vmatprep.mubr.msk.f32.mxu0 %vm855_vm0, %v856_v1  ;;  %v63_v3 = vld [vmem:[%s1096_s1 + $0x8] sm:$0xff]  ;;  %v64_v4 = vld [vmem:[%s1096_s1 + $0x10] sm:$0xff]  ;;  %v65_v6 = vld [vmem:[%s1096_s1 + $0x18] sm:$0xff]  ;;  %s857_s3 = smov [#allocation7]   ;;  %vm444_vm4 = vcmask 523264  }
  0x28   :  { %698 = vmatprep.subr.bf16.mxu1 %v854_v0  ;;  %601 = vmatprep.mubr.msk.f32.mxu1 %vm855_vm0, %v856_v1  ;;  %v675_v5 = vpack.c.bf16 %v63_v3, %v62_v2  ;;  %v678_v7 = vpack.c.bf16 %v65_v6, %v64_v4  ;;  %v66_v8 = vld [vmem:[%s1096_s1 + $0x20] sm:$0xff]  ;;  %v67_v9 = vld [vmem:[%s1096_s1 + $0x28] sm:$0xff]  ;;  %v160_v12 = vld [vmem:[#allocation2 + $0x10] sm:$0xff] }
  0x29   :  { %v158_v10 = vld [vmem:[#allocation2] sm:$0xff]  ;;  %v159_v11 = vld [vmem:[#allocation2 + $0x8] sm:$0xff]  ;;  %v161_v13 = vld [vmem:[#allocation2 + $0x18] sm:$0xff]  ;;  %v681_v14 = vpack.c.bf16 %v67_v9, %v66_v8 }
  0x2a   :  { %676 = vmatpush3.bf16.msra.mxu0 %v675_v5  ;;  %v699_v15 = vpack.c.bf16 %v159_v11, %v158_v10  ;;  %v68_v16 = vld [vmem:[%s1096_s1 + $0x30] sm:$0xff]  ;;  %v69_v17 = vld [vmem:[%s1096_s1 + $0x38] sm:$0xff]  ;;  %v702_v18 = vpack.c.bf16 %v161_v13, %v160_v12  ;;  %v162_v19 = vld [vmem:[#allocation2 + $0x20] sm:$0xff] }
  0x2b   :  { %677 = vmatprep.subr.bf16.mxu0 %v854_v0  ;;  %v163_v20 = vld [vmem:[#allocation2 + $0x28] sm:$0xff]  ;;  %v684_v21 = vpack.c.bf16 %v69_v17, %v68_v16  ;;  %v70_v22 = vld [vmem:[%s1096_s1 + $0x40] sm:$0xff]  ;;  %v164_v25 = vld [vmem:[#allocation2 + $0x30] sm:$0xff] }
  0x2c   :  { %700 = vmatpush3.bf16.msra.mxu1 %v699_v15  ;;  %v71_v23 = vld [vmem:[%s1096_s1 + $0x48] sm:$0xff]  ;;  %v705_v24 = vpack.c.bf16 %v163_v20, %v162_v19  ;;  %v165_v26 = vld [vmem:[#allocation2 + $0x38] sm:$0xff]  ;;  %v72_v28 = vld [vmem:[%s1096_s1 + $0x50] sm:$0xff] }
  0x2d   :  { %701 = vmatprep.subr.bf16.mxu1 %v854_v0  ;;  %v687_v27 = vpack.c.bf16 %v71_v23, %v70_v22  ;;  %v73_v29 = vld [vmem:[%s1096_s1 + $0x58] sm:$0xff]  ;;  %v708_v30 = vpack.c.bf16 %v165_v26, %v164_v25  ;;  %v166_v31 = vld [vmem:[#allocation2 + $0x40] sm:$0xff]  ;;  %v167_v32 = vld [vmem:[#allocation2 + $0x48] sm:$0xff] }
  0x2e   :  { %679 = vmatpush3.bf16.msra.mxu0 %v678_v7  ;;  %v690_v33 = vpack.c.bf16 %v73_v29, %v72_v28  ;;  %v74_v34 = vld [vmem:[%s1096_s1 + $0x60] sm:$0xff]  ;;  %v75_v35 = vld [vmem:[%s1096_s1 + $0x68] sm:$0xff]  ;;  %v711_v36 = vpack.c.bf16 %v167_v32, %v166_v31  ;;  %v168_v37 = vld [vmem:[#allocation2 + $0x50] sm:$0xff] }
  0x2f   :  { %680 = vmatprep.subr.bf16.mxu0 %v854_v0  ;;  %v169_v38 = vld [vmem:[#allocation2 + $0x58] sm:$0xff]  ;;  %v693_v39 = vpack.c.bf16 %v75_v35, %v74_v34  ;;  %v76_v40 = vld [vmem:[%s1096_s1 + $0x70] sm:$0xff]  ;;  %v170_v43 = vld [vmem:[#allocation2 + $0x60] sm:$0xff] }
  0x30   :  { %703 = vmatpush3.bf16.msra.mxu1 %v702_v18  ;;  %v77_v41 = vld [vmem:[%s1096_s1 + $0x78] sm:$0xff]  ;;  %v714_v42 = vpack.c.bf16 %v169_v38, %v168_v37  ;;  %v171_v44 = vld [vmem:[#allocation2 + $0x68] sm:$0xff]  ;;  %v61_v47 = vld [vmem:[%s1095_s0] sm:$0xff] }
  0x31   :  { %704 = vmatprep.subr.bf16.mxu1 %v854_v0  ;;  %v696_v45 = vpack.c.bf16 %v77_v41, %v76_v40  ;;  %v717_v46 = vpack.c.bf16 %v171_v44, %v170_v43  ;;  %v172_v48 = vld [vmem:[#allocation2 + $0x70] sm:$0xff]  ;;  %v173_v49 = vld [vmem:[#allocation2 + $0x78] sm:$0xff]  ;;  %v254_v51 = vld [vmem:[#allocation5] sm:$0xff] }
  0x32   :  { %682 = vmatpush3.bf16.msra.mxu0 %v681_v14  ;;  %v720_v50 = vpack.c.bf16 %v173_v49, %v172_v48  ;;  %v255_v52 = vld [vmem:[#allocation5 + $0x8] sm:$0xff]  ;;  %v256_v53 = vld [vmem:[#allocation5 + $0x10] sm:$0xff]  ;;  %v257_v55 = vld [vmem:[#allocation5 + $0x18] sm:$0xff] }
  0x33   :  { %683 = vmatprep.subr.bf16.mxu0 %v854_v0  ;;  %v723_v54 = vpack.c.bf16 %v255_v52, %v254_v51  ;;  %v726_v56 = vpack.c.bf16 %v257_v55, %v256_v53  ;;  %v258_v57 = vld [vmem:[#allocation5 + $0x20] sm:$0xff]  ;;  %v259_v58 = vld [vmem:[#allocation5 + $0x28] sm:$0xff]  ;;  %v260_v60 = vld [vmem:[#allocation5 + $0x30] sm:$0xff] }
  0x34   :  { %706 = vmatpush3.bf16.msra.mxu1 %v705_v24  ;;  %v729_v59 = vpack.c.bf16 %v259_v58, %v258_v57  ;;  %v261_v61 = vld [vmem:[#allocation5 + $0x38] sm:$0xff]  ;;  %v262_v63 = vld [vmem:[#allocation5 + $0x40] sm:$0xff]  ;;  %v263_v2 = vld [vmem:[#allocation5 + $0x48] sm:$0xff] }
  0x35   :  { %707 = vmatprep.subr.bf16.mxu1 %v854_v0  ;;  %v732_v62 = vpack.c.bf16 %v261_v61, %v260_v60  ;;  %v735_v3 = vpack.c.bf16 %v263_v2, %v262_v63  ;;  %v264_v4 = vld [vmem:[#allocation5 + $0x50] sm:$0xff]  ;;  %v265_v5 = vld [vmem:[#allocation5 + $0x58] sm:$0xff]  ;;  %v266_v7 = vld [vmem:[#allocation5 + $0x60] sm:$0xff] }
  0x36   :  { %685 = vmatpush3.bf16.msra.mxu0 %v684_v21  ;;  %v738_v6 = vpack.c.bf16 %v265_v5, %v264_v4  ;;  %v267_v8 = vld [vmem:[#allocation5 + $0x68] sm:$0xff]  ;;  %v462_v10 = vld [vmem:[%s1097_s2] ss:$0 sm:$0xff]  ;;  %v268_v16 = vld [vmem:[#allocation5 + $0x70] sm:$0xff] }
  0x37   :  { %686 = vmatprep.subr.bf16.mxu0 %v854_v0  ;;  %v741_v9 = vpack.c.bf16 %v267_v8, %v266_v7  ;;  %v269_v17 = vld [vmem:[#allocation5 + $0x78] sm:$0xff]  ;;  %v350_v19 = vld [vmem:[%s1102_s7] sm:$0xff]  ;;  %v351_v20 = vld [vmem:[%s1102_s7 + $0x8] sm:$0xff] }
  0x38   :  { %709 = vmatpush3.bf16.msra.mxu1 %v708_v30  ;;  %v744_v18 = vpack.c.bf16 %v269_v17, %v268_v16  ;;  %v352_v21 = vld [vmem:[%s1102_s7 + $0x10] sm:$0xff]  ;;  %v747_v22 = vpack.c.bf16 %v351_v20, %v350_v19  ;;  %v354_v24 = vld [vmem:[%s1102_s7 + $0x20] sm:$0xff]  ;;  %v355_v25 = vld [vmem:[%s1102_s7 + $0x28] sm:$0xff] }
  0x39   :  { %710 = vmatprep.subr.bf16.mxu1 %v854_v0  ;;  %v753_v26 = vpack.c.bf16 %v355_v25, %v354_v24  ;;  %v357_v28 = vld [vmem:[%s1102_s7 + $0x38] sm:$0xff]  ;;  %v358_v30 = vld [vmem:[%s1102_s7 + $0x40] sm:$0xff]  ;;  %v359_v31 = vld [vmem:[%s1102_s7 + $0x48] sm:$0xff] }
  0x3a   :  { %688 = vmatpush3.bf16.msra.mxu0 %v687_v27  ;;  %v356_v27 = vld [vmem:[%s1102_s7 + $0x30] sm:$0xff]  ;;  %v759_v32 = vpack.c.bf16 %v359_v31, %v358_v30  ;;  %v361_v34 = vld [vmem:[%s1102_s7 + $0x58] sm:$0xff]  ;;  %v363_v37 = vld [vmem:[%s1102_s7 + $0x68] sm:$0xff] }
  0x3b   :  { %689 = vmatprep.subr.bf16.mxu0 %v854_v0  ;;  %v756_v29 = vpack.c.bf16 %v357_v28, %v356_v27  ;;  %v465_v53 = vld [vmem:[%s1103_s8] ss:$0 sm:$0xff] }
  0x3c   :  { %712 = vmatpush3.bf16.msra.mxu1 %v711_v36  ;;  %v362_v36 = vld [vmem:[%s1102_s7 + $0x60] sm:$0xff] }
  0x3d   :  { %713 = vmatprep.subr.bf16.mxu1 %v854_v0  ;;  %v765_v38 = vpack.c.bf16 %v363_v37, %v362_v36 }
  0x3e   :  { %691 = vmatpush3.bf16.msra.mxu0 %v690_v33  ;;  %v360_v33 = vld [vmem:[%s1102_s7 + $0x50] sm:$0xff] }
  0x3f   :  { %692 = vmatprep.subr.bf16.mxu0 %v854_v0  ;;  %v762_v35 = vpack.c.bf16 %v361_v34, %v360_v33 }
  0x40   :  { %715 = vmatpush3.bf16.msra.mxu1 %v714_v42 }
  0x41   :  { %716 = vmatprep.subr.bf16.mxu1 %v854_v0 }
  0x42   :  { %694 = vmatpush3.bf16.msra.mxu0 %v693_v39  ;;  %v463_v39 = vld [vmem:[%s1099_s4] ss:$0 sm:$0xff] }
  0x43   :  { %695 = vmatprep.subr.bf16.mxu0 %v854_v0 }
  0x44   :  { %718 = vmatpush3.bf16.msra.mxu1 %v717_v46  ;;  %v365_v46 = vld [vmem:[%s1102_s7 + $0x78] sm:$0xff] }
  0x45   :  { %719 = vmatprep.subr.bf16.mxu1 %v854_v0 }
  0x46   :  { %697 = vmatpush3.bf16.msra.mxu0 %v696_v45  ;;  %v364_v45 = vld [vmem:[%s1102_s7 + $0x70] sm:$0xff] }
  0x47   :  { %722 = vmatprep.subr.bf16.mxu0 %v854_v0 }
  0x48   :  { %721 = vmatpush3.bf16.msra.mxu1 %v720_v50 }
  0x49   :  { %567 = vmatmul.mubr.f32.vlgmr.msra.gmra.mrb[0].mxu0 %v61_v47  ;;  %746 = vmatprep.subr.bf16.mxu1 %v854_v0  ;;  %v464_v47 = vld [vmem:[%s1101_s6] ss:$0 sm:$0xff] }
  0x4a   :  { %636 = vmatprep.mubr.msk.f32.mxu0 %vm855_vm0, %v856_v1  ;;  %724 = vmatpush3.bf16.msra.mxu0 %v723_v54 }
  0x4b   :  { %725 = vmatprep.subr.bf16.mxu0 %v854_v0 }
  0x4e   :  { %727 = vmatpush3.bf16.msra.mxu0 %v726_v56 }
  0x4f   :  { %728 = vmatprep.subr.bf16.mxu0 %v854_v0 }
  0x52   :  { %730 = vmatpush3.bf16.msra.mxu0 %v729_v59 }
  0x53   :  { %731 = vmatprep.subr.bf16.mxu0 %v854_v0 }
  0x56   :  { %733 = vmatpush3.bf16.msra.mxu0 %v732_v62 }
  0x57   :  { %734 = vmatprep.subr.bf16.mxu0 %v854_v0 }
  0x5a   :  { %736 = vmatpush3.bf16.msra.mxu0 %v735_v3 }
  0x5b   :  { %737 = vmatprep.subr.bf16.mxu0 %v854_v0 }
  0x5e   :  { %739 = vmatpush3.bf16.msra.mxu0 %v738_v6 }
  0x5f   :  { %740 = vmatprep.subr.bf16.mxu0 %v854_v0 }
  0x62   :  { %742 = vmatpush3.bf16.msra.mxu0 %v741_v9 }
  0x63   :  { %743 = vmatprep.subr.bf16.mxu0 %v854_v0 }
  0x66   :  { %745 = vmatpush3.bf16.msra.mxu0 %v744_v18 }
 0x11c   :  { %v151_v11 = vpop.f32.mrb[0].mxu0 }
 0x11d   :  { %v152_v12 = vadd.f32 %v462_v10, %v151_v11  ;;  %v568_v13 = vpop.f32.mrb[1].mxu0 }
 0x11f   :  { %v156_v14 = vmul.f32 0.2, %v152_v12  ;;  %vm155_vm1 = vcmp.ge.f32.partialorder %v152_v12, 0.0 }
 0x121   :  { %v157_v15 = vsel %vm155_vm1, %v152_v12, %v156_v14 }
 0x122   :  { %602 = vmatmul.mubr.f32.vlgmr.msra.gmra.mrb[0].mxu1 %v157_v15 }
 0x123   :  { %671 = vmatprep.mubr.msk.f32.mxu1 %vm855_vm0, %v856_v1  ;;  %v353_v1 = vld [vmem:[%s1102_s7 + $0x18] sm:$0xff]  ;;  %748 = vmatpush3.bf16.msra.mxu1 %v747_v22  ;;  %s452_s7 = sshll.u32 %s857_s3, 4  ;;  %s453_s7 = int_to_ptr.vmem [resolvable:$true] %s452_s7 }
 0x124   :  { %v750_v23 = vpack.c.bf16 %v353_v1, %v352_v21  ;;  %749 = vmatprep.subr.bf16.mxu1 %v854_v0  ;;  %s822_s6 = scalar_lea.vmem %s453_s7, 128  ;;  %p827_p3 = scmp.lt.s32.totalorder %s453_s7, %s453_s7 }
 0x125   :  { %p823_p2 = scmp.ne.s32.totalorder %s453_s7, %s822_s6  ;;  %p828_p4 = scmp.lt.s32.totalorder %s822_s6, %s822_s6 }
 0x127   :  { %751 = vmatpush3.bf16.msra.mxu1 %v750_v23  ;;  %p829_p5 = por %p828_p4, %p827_p3 }
 0x128   :  { %752 = vmatprep.subr.bf16.mxu1 %v854_v0 }
 0x129   :  { %p830_p6 = pnand %p829_p5, %p823_p2 }
 0x12b   :  { %754 = vmatpush3.bf16.msra.mxu1 %v753_v26 }
 0x12c   :  { %755 = vmatprep.subr.bf16.mxu1 %v854_v0 }
 0x12f   :  { %757 = vmatpush3.bf16.msra.mxu1 %v756_v29 }
 0x130   :  { %758 = vmatprep.subr.bf16.mxu1 %v854_v0 }
 0x133   :  { %760 = vmatpush3.bf16.msra.mxu1 %v759_v32 }
 0x134   :  { %761 = vmatprep.subr.bf16.mxu1 %v854_v0 }
 0x137   :  { %763 = vmatpush3.bf16.msra.mxu1 %v762_v35 }
 0x138   :  { %764 = vmatprep.subr.bf16.mxu1 %v854_v0 }
 0x13b   :  { %766 = vmatpush3.bf16.msra.mxu1 %v765_v38 }
 0x13c   :  { %767 = vmatprep.subr.bf16.mxu1 %v854_v0  ;;  %v768_v0 = vpack.c.bf16 %v365_v46, %v364_v45 }
 0x13f   :  { %769 = vmatpush3.bf16.msra.mxu1 %v768_v0 }
 0x1f5   :  { %v247_v40 = vpop.f32.mrb[0].mxu1 }
 0x1f6   :  { %v248_v41 = vadd.f32 %v463_v39, %v247_v40  ;;  %v603_v42 = vpop.f32.mrb[1].mxu1 }
 0x1f8   :  { %vm251_vm2 = vcmp.ge.f32.partialorder %v248_v41, 0.0  ;;  %v252_v43 = vmul.f32 0.2, %v248_v41 }
 0x1fa   :  { %v253_v44 = vsel %vm251_vm2, %v248_v41, %v252_v43 }
 0x1fb   :  { %637 = vmatmul.mubr.f32.vlgmr.msra.gmra.mrb[2].mxu0 %v253_v44 }
 0x2ce   :  { %v343_v48 = vpop.f32.mrb[2].mxu0 }
 0x2cf   :  { %v344_v49 = vadd.f32 %v464_v47, %v343_v48  ;;  %v638_v50 = vpop.f32.mrb[3].mxu0 }
 0x2d1   :  { %vm347_vm3 = vcmp.ge.f32.partialorder %v344_v49, 0.0  ;;  %v348_v51 = vmul.f32 0.2, %v344_v49 }
 0x2d3   :  { %v349_v52 = vsel %vm347_vm3, %v344_v49, %v348_v51 }
 0x2d4   :  { %672 = vmatmul.mubr.f32.vlgmr.msra.gmra.mrb[2].mxu1 %v349_v52 }
 0x3a7   :  { %v439_v54 = vpop.f32.mrb[2].mxu1 }
 0x3a8   :  { %v440_v55 = vadd.f32 %v465_v53, %v439_v54  ;;  %v673_v56 = vpop.f32.mrb[3].mxu1 }
 0x3aa   :  { %v443_v57 = vmax.f32 %v440_v55, 0.0 }
 0x3ac   :  { %445 = vst.msk [vmem:[#allocation7] sm:$0xff] %vm444_vm4, %v443_v57 }
 0x3ad   :  { %833 = shalt.err (!%p830_p6)
}
 0x3ae   :  { %s834_s8 = scalar_lea.hbm %s1104_s9, 128 }
 0x3af   :  { %p835_p7 = scmp.ne.s32.totalorder %s1104_s9, %s834_s8  ;;  %p838_p8 = scmp.lt.u32.totalorder %s834_s8, %s1104_s9 }
 0x3b1   :  { %p840_p9 = pnand %p838_p8, %p835_p7 }
 0x3b3   :  { %843 = shalt.err (!%p840_p9)
}
 0x3b4   :  { %455 = dma.vmem_to_hbm [thread:$0]  %s453_s7, 128, %s1104_s9, [#allocation4]  }
 0x3b5   :  { %848 = dma.done.wait [#allocation4], 128  }
 0x3b6   :  { %849 = vsyncadd [#allocation4], 4294967168 }
 0x3b7   :  { %459 = vsyncpa [#allocation3], 1 }
 0x3b8   :  { %460 = vsyncpa [#allocation6], 1 }
 0x3b9   :  { %461 = vsyncpa [#allocation4], 1 }

</bundles_post_ra>
